<compile_context>
chip_gen: v6e
topology: v6e:2x2x1
jax: 0.10.0
libtpu: 0.0.40
codegen_flags: <defaults>
</compile_context>

<pallas_src>
import functools

import jax
import jax.numpy as jnp
import numpy as np
from jax import lax
from jax.experimental import pallas as pl
from jax.experimental.pallas import tpu as pltpu


# ---------------------------------------------------------------------------
# Kernel 1: tiled linear   y = x @ w + b     (grid over M-tiles x N-tiles)
# ---------------------------------------------------------------------------
def _linear_kernel(x_ref, w_ref, b_ref, o_ref):
    o_ref[...] = (
        jnp.dot(x_ref[...], w_ref[...], preferred_element_type=jnp.float32)
        + b_ref[...]
    ).astype(o_ref.dtype)


def pallas_linear(x, w, b, *, tile_m=256, tile_n=256):
    """x: (M, K), w: (K, N), b: (N,) -> (M, N).  K kept resident (typical E)."""
    M, K = x.shape
    K2, N = w.shape
    assert K == K2
    tm = min(tile_m, M)   # either full M or a multiple of 8
    tn = min(tile_n, N)   # either full N or a multiple of 128
    b2 = b.reshape(1, N).astype(x.dtype)
    grid = (pl.cdiv(M, tm), pl.cdiv(N, tn))
    # TODO(synk): add a K-tiled variant with an f32 VMEM accumulator for very
    #             large embed dims; for typical E the (K, tn) weight block fits.
    return pl.pallas_call(
        _linear_kernel,
        out_shape=jax.ShapeDtypeStruct((M, N), x.dtype),
        grid=grid,
        in_specs=[
            pl.BlockSpec((tm, K), lambda i, j: (i, 0)),
            pl.BlockSpec((K, tn), lambda i, j: (0, j)),
            pl.BlockSpec((1, tn), lambda i, j: (0, j)),
        ],
        out_specs=pl.BlockSpec((tm, tn), lambda i, j: (i, j)),
        compiler_params=pltpu.CompilerParams(
            dimension_semantics=("parallel", "parallel"),
            vmem_limit_bytes=32 * 1024 * 1024,
        ),
    )(x, w, b2)


# ---------------------------------------------------------------------------
# Kernel 2: fused relation projection + relation attention.
#
# Per grid step (one tile of tgt rows, all batches, all heads):
#   ra[j,i,:] = relation[j, i, b, :] @ Wa.T          (MXU, weights resident)
#   rb[j,i,:] = relation[j, i, b, :] @ Wb.T
#   p[j,i,n]  = (q[i,n] + ra[j,i,n]) * (k[j,n] + rb[j,i,n])     (lane-dense E)
#   scores[j,i,h] = scaling * sum_{n in head h} p[j,i,n]        (selector MXU)
#   softmax over j, then per-head  out[i,:] = sum_j w[j,i] * v[j,:]   (MXU)
# ---------------------------------------------------------------------------
def _fused_rel_attn_kernel(q_ref, k_ref, v_ref, rel_ref, wa_ref, wb_ref,
                           sel_ref, o_ref, *, num_heads):
    S, tT, B, E = rel_ref.shape
    hd = E // num_heads

    q_all = q_ref[...]       # (tT, B, E)
    k_all = k_ref[...]       # (S,  B, E)
    v_all = v_ref[...]       # (S,  B, E)
    rel_all = rel_ref[...]   # (S, tT, B, E);  rel_all[j, i, b, :] = relation[j, i0+i, b, :]
    wa = wa_ref[...]         # (E, E)
    wb = wb_ref[...]         # (E, E)
    sel = sel_ref[...]       # (E, H)  scaling-folded head selector

    for b in range(B):       # static unroll, B is small
        q_b = q_all[:, b, :]                      # (tT, E)
        k_b = k_all[:, b, :]                      # (S,  E)
        v_b = v_all[:, b, :]                      # (S,  E)

        rel2 = rel_all[:, :, b, :].reshape(S * tT, E)
        ra = jnp.dot(rel2, wa, preferred_element_type=jnp.float32).reshape(S, tT, E)
        rb = jnp.dot(rel2, wb, preferred_element_type=jnp.float32).reshape(S, tT, E)

        # 3 lane-dense VPU passes over the (S, tT, E) cube.
        p = (q_b[None, :, :] + ra) * (k_b[:, None, :] + rb)

        # Per-head segment reduction + scaling on the MXU.
        scores = jnp.dot(p.reshape(S * tT, E), sel,
                         preferred_element_type=jnp.float32)
        scores = scores.reshape(S, tT, num_heads)

        # Softmax over the src axis (j = axis 0), as in the torch module.
        m = jnp.max(scores, axis=0, keepdims=True)
        e = jnp.exp(scores - m)
        l = jnp.sum(e, axis=0, keepdims=True)
        w = e * pl.reciprocal(l, approx=False)    # (S, tT, H)

        head_outs = []
        for h in range(num_heads):
            w_h = w[:, :, h]                                  # (S, tT)
            v_h = v_b[:, h * hd:(h + 1) * hd]                 # (S, hd)
            # out_h[i, n] = sum_j w_h[j, i] * v_h[j, n]
            head_outs.append(
                lax.dot_general(w_h, v_h, (((0,), (0,)), ((), ())),
                                preferred_element_type=jnp.float32))
        # Lane-dense (tT, E) store, directly in (T, B, E) order.
        o_ref[:, b, :] = jnp.concatenate(head_outs, axis=-1).astype(o_ref.dtype)


def _round_up(x, m):
    return (x + m - 1) // m * m


def _pick_tile_t(T, S, B, E, budget_bytes=6 * 1024 * 1024):
    """Largest divisor of T whose relation block stays within the VMEM budget."""
    bytes_per_row = S * _round_up(B, 8) * E * 4   # B is sublane-padded to 8
    max_t = max(1, budget_bytes // max(1, bytes_per_row))
    t = min(T, max_t)
    while T % t:
        t -= 1
    return t


def fused_rel_attention(q, k, v, relation, wa_t, wb_t, sel, *, num_heads, tile_t):
    T, B, E = q.shape
    S = k.shape[0]
    assert T % tile_t == 0
    kernel = functools.partial(_fused_rel_attn_kernel, num_heads=num_heads)
    return pl.pallas_call(
        kernel,
        out_shape=jax.ShapeDtypeStruct((T, B, E), q.dtype),
        grid=(T // tile_t,),
        in_specs=[
            pl.BlockSpec((tile_t, B, E), lambda i: (i, 0, 0)),      # q  (tgt tile)
            pl.BlockSpec((S, B, E), lambda i: (0, 0, 0)),           # k  (resident)
            pl.BlockSpec((S, B, E), lambda i: (0, 0, 0)),           # v  (resident)
            # relation read from its natural (T, S, B, E) layout; the torch
            # transpose(0, 1) is the index_map swap: full tgt axis (= src
            # positions j), tile over the src axis with the tgt-tile index.
            pl.BlockSpec((S, tile_t, B, E), lambda i: (0, i, 0, 0)),
            pl.BlockSpec((E, E), lambda i: (0, 0)),                 # Wa.T (resident)
            pl.BlockSpec((E, E), lambda i: (0, 0)),                 # Wb.T (resident)
            pl.BlockSpec((E, num_heads), lambda i: (0, 0)),         # head selector
        ],
        out_specs=pl.BlockSpec((tile_t, B, E), lambda i: (i, 0, 0)),
        compiler_params=pltpu.CompilerParams(
            dimension_semantics=("parallel",),
            vmem_limit_bytes=32 * 1024 * 1024,
        ),
    )(q, k, v, relation, wa_t, wb_t, sel)


# ---------------------------------------------------------------------------
# Module wrapper
# ---------------------------------------------------------------------------
def init_params(key, embed_dim):
    k1, k2, k3 = jax.random.split(key, 3)
    std = 0.02
    return {
        "in_proj_weight": std * jax.random.normal(k1, (3 * embed_dim, embed_dim), jnp.float32),
        "in_proj_bias": jnp.zeros((3 * embed_dim,), jnp.float32),
        "relation_in_proj_weight": std * jax.random.normal(k2, (2 * embed_dim, embed_dim), jnp.float32),
        "out_proj_weight": std * jax.random.normal(k3, (embed_dim, embed_dim), jnp.float32),
        "out_proj_bias": jnp.zeros((embed_dim,), jnp.float32),
    }


def relation_multihead_attention(params, query, key, value, relation, num_heads,
                                 *, tile_t=None):
    T, B, E = query.shape
    S = key.shape[0]
    assert S == T, "torch broadcast in the reference module requires tgt_len == src_len"
    H = num_heads
    hd = E // H
    assert hd * H == E
    scaling = hd ** (-0.5)

    if tile_t is None:
        tile_t = _pick_tile_t(T, S, B, E)
    assert T % tile_t == 0

    # q/k/v projections (F.linear -> x @ W.T + b), tiled linear kernel.
    Wi = params["in_proj_weight"]   # (3E, E)
    bi = params["in_proj_bias"]     # (3E,)
    q = pallas_linear(query.reshape(T * B, E), Wi[:E].T, bi[:E]).reshape(T, B, E)
    k = pallas_linear(key.reshape(S * B, E), Wi[E:2 * E].T, bi[E:2 * E]).reshape(S, B, E)
    v = pallas_linear(value.reshape(S * B, E), Wi[2 * E:].T, bi[2 * E:]).reshape(S, B, E)

    # Relation projection weights stay as (E, E) operands of the fused kernel.
    Wr = params["relation_in_proj_weight"]  # (2E, E), no bias
    wa_t = Wr[:E].T                          # ra = x @ Wa.T
    wb_t = Wr[E:].T                          # rb = x @ Wb.T

    # Head-segment selector with the softmax scaling folded in.
    sel = scaling * jnp.repeat(jnp.eye(H, dtype=jnp.float32), hd, axis=0)  # (E, H)

    attn = fused_rel_attention(q, k, v, relation, wa_t, wb_t, sel,
                               num_heads=H, tile_t=tile_t)        # (T, B, E)

    Wo = params["out_proj_weight"]
    bo = params["out_proj_bias"]
    out = pallas_linear(attn.reshape(T * B, E), Wo.T, bo).reshape(T, B, E)
    return out


# ---------------------------------------------------------------------------
# Pure-JAX reference (direct transcription of the torch forward) for checking
# ---------------------------------------------------------------------------
def reference_forward(params, query, key, value, relation, num_heads):
    T, B, E = query.shape
    S = key.shape[0]
    H = num_heads
    hd = E // H
    scaling = hd ** (-0.5)
    Wi, bi = params["in_proj_weight"], params["in_proj_bias"]
    q = query @ Wi[:E].T + bi[:E]
    k = key @ Wi[E:2 * E].T + bi[E:2 * E]
    v = value @ Wi[2 * E:].T + bi[2 * E:]
    q = q.reshape(T, B * H, hd)
    k = k.reshape(S, B * H, hd)
    v = v.reshape(S, B * H, hd)
    r = relation @ params["relation_in_proj_weight"].T
    ra, rb = r[..., :E], r[..., E:]
    ra = ra.reshape(T, S, B * H, hd).transpose(1, 0, 2, 3)
    rb = rb.reshape(T, S, B * H, hd).transpose(1, 0, 2, 3)
    qf = (q[:, None, :, :] + ra) * scaling
    kf = k[None, :, :, :] + rb
    w = jnp.einsum("ijbn,ijbn->ijb", qf, kf)
    w = jax.nn.softmax(w, axis=1)
    attn = jnp.einsum("ijb,jbn->bin", w, v)
    attn = attn.transpose(1, 0, 2).reshape(T, B, E)
    return attn @ params["out_proj_weight"].T + params["out_proj_bias"]


if __name__ == "__main__":
    # Config 1: small shapes, single T tile.
    T = S = 8
    B = 2
    E = 32
    H = 4

    root = jax.random.PRNGKey(0)
    kp, kq, kk, kv, kr = jax.random.split(root, 5)
    params = init_params(kp, E)
    query = jax.random.normal(kq, (T, B, E), jnp.float32)
    key = jax.random.normal(kk, (S, B, E), jnp.float32)
    value = jax.random.normal(kv, (S, B, E), jnp.float32)
    relation = jax.random.normal(kr, (T, S, B, E), jnp.float32)

    out = relation_multihead_attention(params, query, key, value, relation, H)
    out = jax.block_until_ready(out)
    ref = reference_forward(params, query, key, value, relation, H)
    np.testing.assert_allclose(np.asarray(out), np.asarray(ref), rtol=1e-4, atol=1e-4)

    # Config 2: exercises the T-tiled path (grid of 2 tgt tiles).
    T2 = S2 = 16
    B2 = 2
    E2 = 32
    H2 = 4
    ks = jax.random.split(jax.random.PRNGKey(1), 5)
    params2 = init_params(ks[0], E2)
    q2 = jax.random.normal(ks[1], (T2, B2, E2), jnp.float32)
    k2 = jax.random.normal(ks[2], (S2, B2, E2), jnp.float32)
    v2 = jax.random.normal(ks[3], (S2, B2, E2), jnp.float32)
    r2 = jax.random.normal(ks[4], (T2, S2, B2, E2), jnp.float32)

    out2 = relation_multihead_attention(params2, q2, k2, v2, r2, H2, tile_t=8)
    out2 = jax.block_until_ready(out2)
    ref2 = reference_forward(params2, q2, k2, v2, r2, H2)
    np.testing.assert_allclose(np.asarray(out2), np.asarray(ref2), rtol=1e-4, atol=1e-4)

    print("KERNEL_OK")
</pallas_src>

<mosaic_0001>
module attributes {stable_mosaic.version = 11 : i64} {
  func.func @_linear_kernel(%arg0: i32, %arg1: i32, %arg2: memref<16x32xf32, #tpu.memory_space<vmem>>, %arg3: memref<32x32xf32, #tpu.memory_space<vmem>>, %arg4: memref<1x32xf32, #tpu.memory_space<vmem>>, %arg5: memref<16x32xf32, #tpu.memory_space<vmem>>) attributes {dimension_semantics = [#tpu.dimension_semantics<parallel>, #tpu.dimension_semantics<parallel>], iteration_bounds = array<i64: 1, 1>, scalar_prefetch = 0 : i64, scratch_operands = 0 : i64, tpu.core_type = #tpu.core_type<tc>, window_params = [{transform_indices = @transform_0, window_bounds = array<i64: 16, 32>}, {transform_indices = @transform_1, window_bounds = array<i64: 32, 32>}, {transform_indices = @transform_2, window_bounds = array<i64: 1, 32>}, {transform_indices = @transform_3, window_bounds = array<i64: 16, 32>}]} {
    %c0 = arith.constant 0 : index
    %c0_0 = arith.constant 0 : index
    %0 = vector.load %arg2[%c0, %c0_0] : memref<16x32xf32, #tpu.memory_space<vmem>>, vector<16x32xf32>
    %c0_1 = arith.constant 0 : index
    %c0_2 = arith.constant 0 : index
    %1 = vector.load %arg3[%c0_1, %c0_2] : memref<32x32xf32, #tpu.memory_space<vmem>>, vector<32x32xf32>
    %cst = arith.constant dense<0.000000e+00> : vector<16x32xf32>
    %2 = tpu.matmul %0, %1, %cst {dimension_numbers = #tpu.dot_dimension_numbers<[1], [0], [0], [1], [0, 0, 1, 1], [], []>} : vector<16x32xf32>, vector<32x32xf32>, vector<16x32xf32> -> vector<16x32xf32>
    %c0_3 = arith.constant 0 : index
    %c0_4 = arith.constant 0 : index
    %3 = vector.load %arg4[%c0_3, %c0_4] : memref<1x32xf32, #tpu.memory_space<vmem>>, vector<1x32xf32>
    %4 = vector.broadcast %3 : vector<1x32xf32> to vector<16x32xf32>
    %5 = arith.addf %2, %4 : vector<16x32xf32>
    %c0_5 = arith.constant 0 : index
    %c0_6 = arith.constant 0 : index
    %6 = vector.load %arg5[%c0_5, %c0_6] : memref<16x32xf32, #tpu.memory_space<vmem>>, vector<16x32xf32>
    tpu.vector_store %arg5[%c0_5, %c0_6], %5 {strides = array<i32>} : memref<16x32xf32, #tpu.memory_space<vmem>>, vector<16x32xf32>,
    return
  }
  func.func @transform_0(%arg0: i32, %arg1: i32) -> (i32, i32) {
    %c0_i32 = arith.constant 0 : i32
    %c0_i32_0 = arith.constant 0 : i32
    return %arg0, %c0_i32 : i32, i32
  }
  func.func @transform_1(%arg0: i32, %arg1: i32) -> (i32, i32) {
    %c0_i32 = arith.constant 0 : i32
    %c0_i32_0 = arith.constant 0 : i32
    return %c0_i32, %arg1 : i32, i32
  }
  func.func @transform_2(%arg0: i32, %arg1: i32) -> (i32, i32) {
    %c0_i32 = arith.constant 0 : i32
    %c0_i32_0 = arith.constant 0 : i32
    return %c0_i32, %arg1 : i32, i32
  }
  func.func @transform_3(%arg0: i32, %arg1: i32) -> (i32, i32) {
    %c0_i32 = arith.constant 0 : i32
    return %arg0, %arg1 : i32, i32
  }
}

</mosaic_0001>

<bundles_post_ra>
// kernel: tpu_custom_call.1
= control target key start
LH: loop header
LB: loop body
LE: loop exit
PB: predicated region body
PF: predicated region fallthrough
CT: control target
= control target key end

     0   :  { %8 = vsyncpa [#allocation3], 0  ;;  %s299_s0 = inlined_call_operand.hbm [shape: f32[16,32], index: 0, kind: input, shape index: {}]   ;;  %s300_s1 = inlined_call_operand.hbm [shape: f32[32,32], index: 1, kind: input, shape index: {}]   ;;  %s301_s2 = inlined_call_operand.vmem [shape: f32[1,32], index: 2, kind: input, shape index: {}]   ;;  %s302_s3 = inlined_call_operand.hbm [shape: f32[16,32], index: 3, kind: output, shape index: {}]  }
   0x1   :  { %9 = vsyncpa [#allocation6], 0 }
   0x2   :  { %10 = vsyncpa [#allocation4], 0  ;;  %s249_s12 = smov [#allocation2]  }
   0x3   :  { %s16_s13 = sshll.u32 %s249_s12, 4  ;;  %s17_s13 = int_to_ptr.vmem [resolvable:$true] %s16_s13 }
   0x4   :  { %s191_s14 = scalar_lea.vmem %s17_s13, 256  ;;  %p196_p1 = scmp.lt.s32.totalorder %s17_s13, %s17_s13 }
   0x5   :  { %p192_p0 = scmp.ne.s32.totalorder %s17_s13, %s191_s14  ;;  %p197_p2 = scmp.lt.s32.totalorder %s191_s14, %s191_s14 }
   0x7   :  { %p198_p3 = por %p197_p2, %p196_p1 }
   0x9   :  { %p199_p4 = pnand %p198_p3, %p192_p0 }
   0xb   :  { %202 = shalt.err (!%p199_p4)
}
   0xc   :  { %s250_s15 = smov 128   ;;  %s251_s16 = smov 8  }
   0xd   :  { %22 = dma.hbm_to_vmem [thread:$0]  %s299_s0, 256, %s17_s13, [#allocation3], %s250_s15, %s250_s15, %s251_s16  }
   0xe   :  { %s252_s19 = smov [#allocation5]  }
   0xf   :  { %s28_s20 = sshll.u32 %s252_s19, 4  ;;  %s29_s20 = int_to_ptr.vmem [resolvable:$true] %s28_s20 }
  0x10   :  { %s211_s21 = scalar_lea.vmem %s29_s20, 512  ;;  %p216_p6 = scmp.lt.s32.totalorder %s29_s20, %s29_s20 }
  0x11   :  { %p212_p5 = scmp.ne.s32.totalorder %s29_s20, %s211_s21  ;;  %p217_p7 = scmp.lt.s32.totalorder %s211_s21, %s211_s21 }
  0x13   :  { %p218_p8 = por %p217_p7, %p216_p6 }
  0x15   :  { %p219_p9 = pnand %p218_p8, %p212_p5 }
  0x17   :  { %222 = shalt.err (!%p219_p9)
}
  0x18   :  { %34 = dma.hbm_to_vmem [thread:$0]  %s300_s1, 512, %s29_s20, [#allocation6], %s250_s15, %s250_s15, %s251_s16  }
  0x19   :  { %243 = dma.done.wait [#allocation3], 256  }
  0x1a   :  { %244 = vsyncadd [#allocation3], 4294967040 }
  0x1b   :  { %245 = dma.done.wait [#allocation6], 512  }
  0x1c   :  { %246 = vsyncadd [#allocation6], 4294966784  ;;  %vm56_vm0 = vcmask 261120   ;;  %v48_v0 = vld [vmem:[#allocation5 + $0x18] sm:$0xff]  ;;  %v47_v1 = vld [vmem:[#allocation5 + $0x10] sm:$0xff]  ;;  %s253_s24 = smov [#allocation7]  }
  0x1d   :  { %167 = vmatprep.subr.mxu0 %v48_v0  ;;  %v43_v2 = vld [vmem:[#allocation2] sm:$0xff]  ;;  %v46_v3 = vld [vmem:[#allocation5 + $0x8] sm:$0xff]  ;;  %v45_v4 = vld [vmem:[#allocation5] sm:$0xff]  ;;  %s145_s25 = sshll.u32 %s253_s24, 4  ;;  %s146_s25 = int_to_ptr.vmem [resolvable:$true] %s145_s25 }
  0x1e   :  { %168 = vmatpush3.msra.mxu0 %v48_v0  ;;  %175 = vmatprep.mubr.msk.f32.mxu0 %vm56_vm0, %v43_v2  ;;  %v44_v5 = vld [vmem:[#allocation2 + $0x8] sm:$0xff]  ;;  %v158_v6 = vld [vmem:[%s301_s2] ss:$0 sm:$0xff]  ;;  %s223_s26 = scalar_lea.vmem %s146_s25, 256  ;;  %p228_p11 = scmp.lt.s32.totalorder %s146_s25, %s146_s25 }
  0x1f   :  { %169 = vmatprep.subr.mxu0 %v47_v1  ;;  %p224_p10 = scmp.ne.s32.totalorder %s146_s25, %s223_s26  ;;  %p229_p12 = scmp.lt.s32.totalorder %s223_s26, %s223_s26 }
  0x20   :  { %170 = vmatpush3.msra.mxu0 %v47_v1 }
  0x21   :  { %171 = vmatprep.subr.mxu0 %v46_v3  ;;  %p230_p13 = por %p229_p12, %p228_p11 }
  0x22   :  { %172 = vmatpush3.msra.mxu0 %v46_v3 }
  0x23   :  { %173 = vmatprep.subr.mxu0 %v45_v4  ;;  %p231_p0 = pnand %p230_p13, %p224_p10 }
  0x24   :  { %174 = vmatpush3.msra.mxu0 %v45_v4 }
  0x25   :  { %176 = vmatmul.mubr.msk.f32.vlgmr.msra.gmra.mxu0 %vm56_vm0, %v44_v5 }
  0xe5   :  { %v177_v7 = vpop.f32.mrf.mxu0 }
  0xe6   :  { %v135_v8 = vadd.f32 %v177_v7, %v158_v6 }
  0xe7   :  { %v129_v9 = vpop.f32.mrf.mxu0 }
  0xe8   :  { %139 = vst.msk [vmem:[#allocation7 + $0x8] sm:$0xff] %vm56_vm0, %v135_v8  ;;  %v130_v10 = vadd.f32 %v158_v6, %v129_v9 }
  0xea   :  { %138 = vst.msk [vmem:[#allocation7] sm:$0xff] %vm56_vm0, %v130_v10 }
  0xeb   :  { %234 = shalt.err (!%p231_p0)
}
  0xec   :  { %151 = dma.vmem_to_hbm [thread:$0]  %s146_s25, 256, %s302_s3, [#allocation4], %s250_s15, %s250_s15, %s251_s16  }
  0xed   :  { %247 = dma.done.wait [#allocation4], 256  }
  0xee   :  { %248 = vsyncadd [#allocation4], 4294967040 }
  0xef   :  { %155 = vsyncpa [#allocation3], 1 }
  0xf0   :  { %156 = vsyncpa [#allocation6], 1 }
  0xf1   :  { %157 = vsyncpa [#allocation4], 1 }

</bundles_post_ra>
